<compile_context>
chip_gen: v6e
topology: v6e:2x2x1
jax: 0.10.0
libtpu: 0.0.40
codegen_flags: <defaults>
</compile_context>

<pallas_src>
import math
from functools import partial

import jax
import jax.numpy as jnp
from jax import lax
from jax.experimental import pallas as pl
from jax.experimental.pallas import tpu as pltpu


# ---------------------------------------------------------------------------
# small helpers
# ---------------------------------------------------------------------------
def _round_up(x, m):
    return ((x + m - 1) // m) * m


def _pad2d(a, rows, cols):
    pr, pc = rows - a.shape[0], cols - a.shape[1]
    if pr or pc:
        a = jnp.pad(a, ((0, pr), (0, pc)))
    return a


def _sublane(dtype):
    # bf16 packs two rows per sublane -> round the second-minor dim to 16.
    return 16 if jnp.dtype(dtype) == jnp.dtype(jnp.bfloat16) else 8


def _tpu_vmem_bytes():
    try:
        return int(pltpu.get_tpu_info().vmem_capacity_bytes)
    except Exception:
        return 64 * 1024 * 1024        # conservative fallback (v7x per-TC VMEM)


def _vmem_budget():
    """(per-step DMA working-set budget in bytes, is_big_vmem_chip)."""
    vmem = _tpu_vmem_bytes()
    big = vmem >= 96 * 1024 * 1024     # v5e/v6e: 128 MiB; v7x: 64 MiB per TC
    return int(vmem * (0.50 if big else 0.35)), big


def _compiler_params():
    vmem = _tpu_vmem_bytes()
    limit = min(int(vmem * 0.80), vmem - 8 * 1024 * 1024)
    return pltpu.CompilerParams(
        dimension_semantics=("parallel", "parallel", "arbitrary"),
        vmem_limit_bytes=limit,
    )


# ---------------------------------------------------------------------------
# tile selection (generation- and stream-count-aware)
# ---------------------------------------------------------------------------
def _choose_wk_tiles(k_in, n_out, n_streams, dtype):
    """(tn, tk) for the weight streams; independent of batch size, so weights
    can be padded once per noise resample / weight update."""
    itemsize = jnp.dtype(dtype).itemsize
    budget, big = _vmem_budget()
    cap_tn = 512
    cap_tk = 2048 if big else 1024

    tn = min(_round_up(n_out, 128), cap_tn)
    tk = min(_round_up(k_in, 128), cap_tk)

    # keep the double-buffered weight streams inside the per-step budget
    while 2 * n_streams * tn * tk * itemsize > budget and tk > 128:
        tk = max(128, _round_up(tk // 2, 128))
    while 2 * n_streams * tn * tk * itemsize > budget and tn > 128:
        tn = max(128, _round_up(tn // 2, 128))
    return tn, tk


def _choose_tm(m, dtype):
    _, big = _vmem_budget()
    cap_tm = 512 if big else 256
    return min(_round_up(m, _sublane(dtype)), cap_tm)


def _make_w_spec(tn, tk, deep):
    idx = lambda i, j, k: (j, k)
    if deep:
        # 3-deep weight pipelining for the GEMV-like regime; fall back cleanly
        # if this jax version's BlockSpec has no pipeline_mode kwarg.
        try:
            return pl.BlockSpec((tn, tk), idx, pipeline_mode=pl.Buffered(3))
        except (AttributeError, TypeError):
            pass
    return pl.BlockSpec((tn, tk), idx)


# ---------------------------------------------------------------------------
# kernels
# ---------------------------------------------------------------------------
def _noisy_linear_kernel(x_ref, wmu_ref, wsig_ref, weps_ref,
                         bmu_ref, bsig_ref, beps_ref, o_ref, acc_ref):
    k = pl.program_id(2)

    @pl.when(k == 0)
    def _():
        acc_ref[...] = jnp.zeros_like(acc_ref)

    # noisy weight tile (tn, tk) formed on the VPU
    w = wmu_ref[...] + wsig_ref[...] * weps_ref[...]
    # x (tm, tk) contracted with w (tn, tk) over the last dims -> (tm, tn);
    # the MXU consumes the transposed RHS natively (no XLU transpose).
    acc_ref[...] += lax.dot_general(
        x_ref[...], w,
        dimension_numbers=(((1,), (1,)), ((), ())),
        preferred_element_type=jnp.float32)

    @pl.when(k == pl.num_programs(2) - 1)
    def _():
        b = bmu_ref[...] + bsig_ref[...] * beps_ref[...]          # (1, tn) f32
        o_ref[...] = (acc_ref[...] + b.astype(jnp.float32)).astype(o_ref.dtype)


def _plain_linear_kernel(x_ref, w_ref, b_ref, o_ref, acc_ref):
    k = pl.program_id(2)

    @pl.when(k == 0)
    def _():
        acc_ref[...] = jnp.zeros_like(acc_ref)

    acc_ref[...] += lax.dot_general(
        x_ref[...], w_ref[...],
        dimension_numbers=(((1,), (1,)), ((), ())),
        preferred_element_type=jnp.float32)

    @pl.when(k == pl.num_programs(2) - 1)
    def _():
        o_ref[...] = (acc_ref[...] + b_ref[...].astype(jnp.float32)
                      ).astype(o_ref.dtype)


# ---------------------------------------------------------------------------
# tiled-linear driver (weights/biases are already padded)
# ---------------------------------------------------------------------------
def _pallas_tiled_matmul(kernel, x_p, w_list, b_list, tm, tn, tk,
                         out_dtype, deep_w):
    Mp, Kp = x_p.shape
    Np = w_list[0].shape[0]
    grid = (Mp // tm, Np // tn, Kp // tk)

    x_spec = pl.BlockSpec((tm, tk), lambda i, j, k: (i, k))
    w_spec = _make_w_spec(tn, tk, deep_w)
    b_spec = pl.BlockSpec((1, tn), lambda i, j, k: (0, j))
    o_spec = pl.BlockSpec((tm, tn), lambda i, j, k: (i, j))

    return pl.pallas_call(
        kernel,
        out_shape=jax.ShapeDtypeStruct((Mp, Np), out_dtype),
        grid_spec=pltpu.PrefetchScalarGridSpec(
            num_scalar_prefetch=0,
            grid=grid,
            in_specs=[x_spec] + [w_spec] * len(w_list) + [b_spec] * len(b_list),
            out_specs=o_spec,
            scratch_shapes=[pltpu.VMEM((tm, tn), jnp.float32)],
        ),
        compiler_params=_compiler_params(),
    )(x_p, *w_list, *b_list)


def _tiled_linear(kernel, x2d, w_p_list, b_p_list, n_out, tn, tk,
                  out_dtype, storage_dtype):
    M, K = x2d.shape
    Np, Kp = w_p_list[0].shape
    if K > Kp:
        raise ValueError("input feature dim larger than prepared weights")

    tm = _choose_tm(M, storage_dtype)
    Mp = _round_up(M, tm)
    budget, big = _vmem_budget()

    # v7x (2 TensorCores/chip): guarantee >= 2 blocks along a parallel axis so
    # both cores get work when batch and fmaps_out are small.
    if (not big) and (Mp // tm == 1) and (Np // tn == 1) and tn >= 256:
        tn //= 2

    # only the (small) activation is padded per call; weights were padded once
    x_p = _pad2d(x2d.astype(storage_dtype), Mp, Kp)

    itemsize = jnp.dtype(storage_dtype).itemsize
    w_step_bytes = len(w_p_list) * tn * tk * itemsize
    deep_w = (tm <= 64) and (Kp // tk >= 3) and (3 * w_step_bytes <= budget)

    out = _pallas_tiled_matmul(kernel, x_p, list(w_p_list), list(b_p_list),
                               tm, tn, tk, out_dtype, deep_w)
    if Mp == M and Np == n_out:
        return out                      # no padding -> no extra slice pass
    return out[:M, :n_out]


# ---------------------------------------------------------------------------
# prepared (padded-once) weights
# ---------------------------------------------------------------------------
@jax.tree_util.register_pytree_node_class
class PreparedLinear:
    """Weights/bias padded (and optionally bf16-cast) once, reused every step."""

    def __init__(self, weights, bias, n_out, k_in, tn, tk):
        self.weights = tuple(weights)   # each (Np, Kp), storage dtype
        self.bias = tuple(bias)         # each (1, Np), float32
        self.n_out = n_out
        self.k_in = k_in
        self.tn = tn
        self.tk = tk

    def tree_flatten(self):
        return ((self.weights, self.bias),
                (self.n_out, self.k_in, self.tn, self.tk))

    @classmethod
    def tree_unflatten(cls, aux, children):
        weights, bias = children
        return cls(weights, bias, *aux)


def prepare_weights(weight, bias, storage_dtype=jnp.float32):
    """Pad/cast a single (fused or mu-only) weight + bias once."""
    n_out, k_in = weight.shape
    tn, tk = _choose_wk_tiles(k_in, n_out, n_streams=1, dtype=storage_dtype)
    Np, Kp = _round_up(n_out, tn), _round_up(k_in, tk)
    w_p = _pad2d(weight.astype(storage_dtype), Np, Kp)
    b_p = _pad2d(bias.astype(jnp.float32).reshape(1, -1), 1, Np)
    return PreparedLinear((w_p,), (b_p,), n_out, k_in, tn, tk)


def prepare_noisy_params(params, storage_dtype=jnp.float32):
    """Pad/cast the 3 weight streams + 3 bias streams once per resample."""
    n_out, k_in = params["weight_mu"].shape
    tn, tk = _choose_wk_tiles(k_in, n_out, n_streams=3, dtype=storage_dtype)
    Np, Kp = _round_up(n_out, tn), _round_up(k_in, tk)
    ws = tuple(_pad2d(params[k].astype(storage_dtype), Np, Kp)
               for k in ("weight_mu", "weight_sigma", "weight_epsilon"))
    bs = tuple(_pad2d(params[k].astype(jnp.float32).reshape(1, -1), 1, Np)
               for k in ("bias_mu", "bias_sigma", "bias_epsilon"))
    return PreparedLinear(ws, bs, n_out, k_in, tn, tk)


def _apply_prepared(kernel, x, prep):
    lead = x.shape[:-1]
    x2d = x.reshape(-1, x.shape[-1])
    if x2d.shape[-1] != prep.k_in:
        raise ValueError("input feature dim does not match prepared weights")
    out = _tiled_linear(kernel, x2d, prep.weights, prep.bias,
                        prep.n_out, prep.tn, prep.tk,
                        out_dtype=x.dtype,
                        storage_dtype=prep.weights[0].dtype)
    return out.reshape(*lead, prep.n_out)


# ---------------------------------------------------------------------------
# public API
# ---------------------------------------------------------------------------
def fuse_noise(params):
    """Fuse mu + sigma*eps once per noise resample (cheapest per-step path)."""
    w = params["weight_mu"] + params["weight_sigma"] * params["weight_epsilon"]
    b = params["bias_mu"] + params["bias_sigma"] * params["bias_epsilon"]
    return w, b


@jax.jit
def linear_prepared(x, prep):
    """Per-step fast path: F.linear with weights already padded/cast once."""
    return _apply_prepared(_plain_linear_kernel, x, prep)


@jax.jit
def noisy_linear_prepared(x, prep):
    """Per-step path forming mu + sigma*eps inside the kernel (3 streams)."""
    return _apply_prepared(_noisy_linear_kernel, x, prep)


@jax.jit
def linear(x, weight, bias):
    """One-off plain linear (pads per call)."""
    return _apply_prepared(_plain_linear_kernel, x, prepare_weights(weight, bias))


@partial(jax.jit, static_argnames=("training", "storage_dtype"))
def noisy_linear(x, params, training=True, storage_dtype=jnp.float32):
    """Drop-in forward of NoisyLinear (F.linear semantics, (..., fmaps_in) x).

    For per-step inference, prefer fuse_noise() + prepare_weights() once per
    noise resample and linear_prepared() per step (padding/fusion hoisted).
    """
    if not training:
        # eval: plain linear on mu only — sigma/epsilon never leave HBM
        prep = prepare_weights(params["weight_mu"], params["bias_mu"],
                               storage_dtype)
        return _apply_prepared(_plain_linear_kernel, x, prep)

    m = 1
    for d in x.shape[:-1]:
        m *= d
    tm = _choose_tm(m, storage_dtype)
    if _round_up(m, tm) // tm > 1:
        # Batch spans >= 2 M-tiles: fuse mu + sigma*eps once (1 weight stream
        # per tile) instead of re-streaming 3 weight tensors per M-tile.
        w, b = fuse_noise(params)
        prep = prepare_weights(w, b, storage_dtype)
        return _apply_prepared(_plain_linear_kernel, x, prep)

    prep = prepare_noisy_params(params, storage_dtype)
    return _apply_prepared(_noisy_linear_kernel, x, prep)


# ---------------------------------------------------------------------------
# deterministic parameter init mirroring NoisyLinear.__init__/resample_noise
# (bias_epsilon sampled independently, exactly as in the reference module)
# ---------------------------------------------------------------------------
def _scale_noise(key, n):
    x = jax.random.normal(key, (n,), dtype=jnp.float32)
    return jnp.sign(x) * jnp.sqrt(jnp.abs(x))


def init_noisy_linear_params(key, fmaps_in, fmaps_out, std_init=0.4):
    k_wmu, k_bmu, k_ein, k_eout, k_beps = jax.random.split(key, 5)
    mu_range = 1.0 / math.sqrt(fmaps_in)

    weight_mu = jax.random.uniform(
        k_wmu, (fmaps_out, fmaps_in), minval=-mu_range, maxval=mu_range,
        dtype=jnp.float32)
    weight_sigma = jnp.full((fmaps_out, fmaps_in),
                            std_init / math.sqrt(fmaps_in), dtype=jnp.float32)
    bias_mu = jax.random.uniform(
        k_bmu, (fmaps_out,), minval=-mu_range, maxval=mu_range,
        dtype=jnp.float32)
    bias_sigma = jnp.full((fmaps_out,),
                          std_init / math.sqrt(fmaps_out), dtype=jnp.float32)

    eps_in = _scale_noise(k_ein, fmaps_in)
    eps_out = _scale_noise(k_eout, fmaps_out)
    weight_epsilon = jnp.outer(eps_out, eps_in)       # epsilon_out.ger(epsilon_in)
    bias_epsilon = _scale_noise(k_beps, fmaps_out)

    return dict(weight_mu=weight_mu, weight_sigma=weight_sigma,
                weight_epsilon=weight_epsilon,
                bias_mu=bias_mu, bias_sigma=bias_sigma,
                bias_epsilon=bias_epsilon)


if __name__ == "__main__":
    key = jax.random.PRNGKey(0)
    k_param, k_x = jax.random.split(key)

    batch, seq, fmaps_in, fmaps_out = 2, 4, 32, 64
    params = init_noisy_linear_params(k_param, fmaps_in, fmaps_out)
    x = jax.random.normal(k_x, (batch, seq, fmaps_in), dtype=jnp.float32)

    w_ref = params["weight_mu"] + params["weight_sigma"] * params["weight_epsilon"]
    b_ref = params["bias_mu"] + params["bias_sigma"] * params["bias_epsilon"]
    ref_train = x @ w_ref.T + b_ref
    ref_eval = x @ params["weight_mu"].T + params["bias_mu"]

    # 1) drop-in training forward (noisy weight formed inside the kernel)
    out_train = jax.block_until_ready(noisy_linear(x, params, training=True))
    assert out_train.shape == (batch, seq, fmaps_out)
    assert jnp.allclose(out_train, ref_train, atol=1e-5, rtol=1e-5)

    # 2) drop-in eval forward (mu-only plain linear kernel)
    out_eval = jax.block_until_ready(noisy_linear(x, params, training=False))
    assert jnp.allclose(out_eval, ref_eval, atol=1e-5, rtol=1e-5)

    # 3) per-step fast path: fuse + pad once per noise resample, reuse per step
    prep = prepare_weights(*fuse_noise(params))
    out_fast = jax.block_until_ready(linear_prepared(x, prep))
    assert jnp.allclose(out_fast, ref_train, atol=1e-5, rtol=1e-5)

    # 4) bf16-storage fast path (f32 accumulation) — halves HBM traffic
    prep_bf16 = prepare_weights(*fuse_noise(params), storage_dtype=jnp.bfloat16)
    out_bf16 = jax.block_until_ready(linear_prepared(x, prep_bf16))
    assert jnp.allclose(out_bf16, ref_train, atol=5e-2, rtol=5e-2)

    print("KERNEL_OK")
</pallas_src>

<mosaic_0001>
module attributes {stable_mosaic.version = 11 : i64} {
  func.func @_noisy_linear_kernel(%arg0: i32, %arg1: i32, %arg2: i32, %arg3: memref<8x128xf32, #tpu.memory_space<vmem>>, %arg4: memref<128x128xf32, #tpu.memory_space<vmem>>, %arg5: memref<128x128xf32, #tpu.memory_space<vmem>>, %arg6: memref<128x128xf32, #tpu.memory_space<vmem>>, %arg7: memref<1x128xf32, #tpu.memory_space<vmem>>, %arg8: memref<1x128xf32, #tpu.memory_space<vmem>>, %arg9: memref<1x128xf32, #tpu.memory_space<vmem>>, %arg10: memref<8x128xf32, #tpu.memory_space<vmem>>, %arg11: memref<8x128xf32, #tpu.memory_space<vmem>>) attributes {dimension_semantics = [#tpu.dimension_semantics<parallel>, #tpu.dimension_semantics<parallel>, #tpu.dimension_semantics<arbitrary>], iteration_bounds = array<i64: 1, 1, 1>, scalar_prefetch = 0 : i64, scratch_operands = 1 : i64, tpu.core_type = #tpu.core_type<tc>, window_params = [{transform_indices = @transform_0, window_bounds = array<i64: 8, 128>}, {transform_indices = @transform_1, window_bounds = array<i64: 128, 128>}, {transform_indices = @transform_2, window_bounds = array<i64: 128, 128>}, {transform_indices = @transform_3, window_bounds = array<i64: 128, 128>}, {transform_indices = @transform_4, window_bounds = array<i64: 1, 128>}, {transform_indices = @transform_5, window_bounds = array<i64: 1, 128>}, {transform_indices = @transform_6, window_bounds = array<i64: 1, 128>}, {transform_indices = @transform_7, window_bounds = array<i64: 8, 128>}]} {
    %c0_i32 = arith.constant 0 : i32
    %0 = arith.cmpi eq, %arg2, %c0_i32 : i32
    %1 = arith.extui %0 : i1 to i32
    %c0_i32_0 = arith.constant 0 : i32
    %2 = arith.cmpi ne, %1, %c0_i32_0 : i32
    scf.if %2 {
      %cst_14 = arith.constant 0.000000e+00 : f32
      %16 = vector.broadcast %cst_14 : f32 to vector<8x128xf32>
      %c0_15 = arith.constant 0 : index
      %c0_16 = arith.constant 0 : index
      %17 = vector.load %arg11[%c0_15, %c0_16] : memref<8x128xf32, #tpu.memory_space<vmem>>, vector<8x128xf32>
      tpu.vector_store %arg11[%c0_15, %c0_16], %16 {strides = array<i32>} : memref<8x128xf32, #tpu.memory_space<vmem>>, vector<8x128xf32>,
    } else {
    }
    %c0 = arith.constant 0 : index
    %c0_1 = arith.constant 0 : index
    %3 = vector.load %arg4[%c0, %c0_1] : memref<128x128xf32, #tpu.memory_space<vmem>>, vector<128x128xf32>
    %c0_2 = arith.constant 0 : index
    %c0_3 = arith.constant 0 : index
    %4 = vector.load %arg5[%c0_2, %c0_3] : memref<128x128xf32, #tpu.memory_space<vmem>>, vector<128x128xf32>
    %c0_4 = arith.constant 0 : index
    %c0_5 = arith.constant 0 : index
    %5 = vector.load %arg6[%c0_4, %c0_5] : memref<128x128xf32, #tpu.memory_space<vmem>>, vector<128x128xf32>
    %6 = arith.mulf %4, %5 : vector<128x128xf32>
    %7 = arith.addf %3, %6 : vector<128x128xf32>
    %c0_6 = arith.constant 0 : index
    %c0_7 = arith.constant 0 : index
    %8 = vector.load %arg11[%c0_6, %c0_7] : memref<8x128xf32, #tpu.memory_space<vmem>>, vector<8x128xf32>
    %c0_8 = arith.constant 0 : index
    %c0_9 = arith.constant 0 : index
    %9 = vector.load %arg3[%c0_8, %c0_9] : memref<8x128xf32, #tpu.memory_space<vmem>>, vector<8x128xf32>
    %cst = arith.constant dense<0.000000e+00> : vector<8x128xf32>
    %10 = tpu.matmul %9, %7, %cst {dimension_numbers = #tpu.dot_dimension_numbers<[1], [1], [0], [0], [0, 0, 1, 0], [], []>} : vector<8x128xf32>, vector<128x128xf32>, vector<8x128xf32> -> vector<8x128xf32>
    %11 = arith.addf %8, %10 : vector<8x128xf32>
    %c0_10 = arith.constant 0 : index
    %c0_11 = arith.constant 0 : index
    %12 = vector.load %arg11[%c0_10, %c0_11] : memref<8x128xf32, #tpu.memory_space<vmem>>, vector<8x128xf32>
    tpu.vector_store %arg11[%c0_10, %c0_11], %11 {strides = array<i32>} : memref<8x128xf32, #tpu.memory_space<vmem>>, vector<8x128xf32>,
    %c0_i32_12 = arith.constant 0 : i32
    %13 = arith.cmpi eq, %arg2, %c0_i32_12 : i32
    %14 = arith.extui %13 : i1 to i32
    %c0_i32_13 = arith.constant 0 : i32
    %15 = arith.cmpi ne, %14, %c0_i32_13 : i32
    scf.if %15 {
      %c0_14 = arith.constant 0 : index
      %c0_15 = arith.constant 0 : index
      %16 = vector.load %arg7[%c0_14, %c0_15] : memref<1x128xf32, #tpu.memory_space<vmem>>, vector<1x128xf32>
      %c0_16 = arith.constant 0 : index
      %c0_17 = arith.constant 0 : index
      %17 = vector.load %arg8[%c0_16, %c0_17] : memref<1x128xf32, #tpu.memory_space<vmem>>, vector<1x128xf32>
      %c0_18 = arith.constant 0 : index
      %c0_19 = arith.constant 0 : index
      %18 = vector.load %arg9[%c0_18, %c0_19] : memref<1x128xf32, #tpu.memory_space<vmem>>, vector<1x128xf32>
      %19 = arith.mulf %17, %18 : vector<1x128xf32>
      %20 = arith.addf %16, %19 : vector<1x128xf32>
      %c0_20 = arith.constant 0 : index
      %c0_21 = arith.constant 0 : index
      %21 = vector.load %arg11[%c0_20, %c0_21] : memref<8x128xf32, #tpu.memory_space<vmem>>, vector<8x128xf32>
      %22 = vector.broadcast %20 : vector<1x128xf32> to vector<8x128xf32>
      %23 = arith.addf %21, %22 : vector<8x128xf32>
      %c0_22 = arith.constant 0 : index
      %c0_23 = arith.constant 0 : index
      %24 = vector.load %arg10[%c0_22, %c0_23] : memref<8x128xf32, #tpu.memory_space<vmem>>, vector<8x128xf32>
      tpu.vector_store %arg10[%c0_22, %c0_23], %23 {strides = array<i32>} : memref<8x128xf32, #tpu.memory_space<vmem>>, vector<8x128xf32>,
    } else {
    }
    return
  }
  func.func @transform_0(%arg0: i32, %arg1: i32, %arg2: i32) -> (i32, i32) {
    %c0_i32 = arith.constant 0 : i32
    return %arg0, %arg2 : i32, i32
  }
  func.func @transform_1(%arg0: i32, %arg1: i32, %arg2: i32) -> (i32, i32) {
    %c0_i32 = arith.constant 0 : i32
    return %arg1, %arg2 : i32, i32
  }
  func.func @transform_2(%arg0: i32, %arg1: i32, %arg2: i32) -> (i32, i32) {
    %c0_i32 = arith.constant 0 : i32
    return %arg1, %arg2 : i32, i32
  }
  func.func @transform_3(%arg0: i32, %arg1: i32, %arg2: i32) -> (i32, i32) {
    %c0_i32 = arith.constant 0 : i32
    return %arg1, %arg2 : i32, i32
  }
  func.func @transform_4(%arg0: i32, %arg1: i32, %arg2: i32) -> (i32, i32) {
    %c0_i32 = arith.constant 0 : i32
    %c0_i32_0 = arith.constant 0 : i32
    return %c0_i32, %arg1 : i32, i32
  }
  func.func @transform_5(%arg0: i32, %arg1: i32, %arg2: i32) -> (i32, i32) {
    %c0_i32 = arith.constant 0 : i32
    %c0_i32_0 = arith.constant 0 : i32
    return %c0_i32, %arg1 : i32, i32
  }
  func.func @transform_6(%arg0: i32, %arg1: i32, %arg2: i32) -> (i32, i32) {
    %c0_i32 = arith.constant 0 : i32
    %c0_i32_0 = arith.constant 0 : i32
    return %c0_i32, %arg1 : i32, i32
  }
  func.func @transform_7(%arg0: i32, %arg1: i32, %arg2: i32) -> (i32, i32) {
    %c0_i32 = arith.constant 0 : i32
    return %arg0, %arg1 : i32, i32
  }
}

</mosaic_0001>

<bundles_post_ra>
// kernel: noisy_linear.1
= control target key start
LH: loop header
LB: loop body
LE: loop exit
PB: predicated region body
PF: predicated region fallthrough
CT: control target
= control target key end

     0   :  { %v294_v3 = vmov 0.0   ;;  %vm295_vm0 = vmmov 0   ;;  %s513_s0 = inlined_call_operand.vmem [shape: f32[8,128], index: 0, kind: input, shape index: {}]   ;;  %s514_s1 = inlined_call_operand.vmem [shape: f32[128,128], index: 1, kind: input, shape index: {}]   ;;  %s515_s2 = inlined_call_operand.vmem [shape: f32[128,128], index: 2, kind: input, shape index: {}]   ;;  %s516_s3 = inlined_call_operand.vmem [shape: f32[128,128], index: 3, kind: input, shape index: {}]   ;;  %s517_s4 = inlined_call_operand.vmem [shape: f32[1,128], index: 4, kind: input, shape index: {}]   ;;  %s518_s5 = inlined_call_operand.vmem [shape: f32[1,128], index: 5, kind: input, shape index: {}]   ;;  %s519_s6 = inlined_call_operand.vmem [shape: f32[1,128], index: 6, kind: input, shape index: {}]   ;;  %s520_s7 = inlined_call_operand.hbm [shape: f32[8,128], index: 7, kind: output, shape index: {}]  }
   0x1   :  { %v47_v0 = vld [vmem:[%s514_s1 + $0x78] sm:$0xff]  ;;  %234 = vmatprep.subr.mxu0 %v294_v3  ;;  %v62_v5 = vld [vmem:[%s515_s2 + $0x70] sm:$0xff]  ;;  %266 = vmatprep.mubr.msk.f32.mxu0 %vm295_vm0, %v294_v3  ;;  %v61_v9 = vld [vmem:[%s515_s2 + $0x68] sm:$0xff] }
   0x2   :  { %v63_v1 = vld [vmem:[%s515_s2 + $0x78] sm:$0xff]  ;;  %v78_v6 = vld [vmem:[%s516_s3 + $0x70] sm:$0xff]  ;;  %v77_v10 = vld [vmem:[%s516_s3 + $0x68] sm:$0xff] }
   0x3   :  { %v79_v2 = vld [vmem:[%s516_s3 + $0x78] sm:$0xff]  ;;  %v46_v7 = vld [vmem:[%s514_s1 + $0x70] sm:$0xff]  ;;  %v94_v8 = vmul.f32 %v78_v6, %v62_v5  ;;  %v93_v13 = vmul.f32 %v77_v10, %v61_v9  ;;  %v45_v14 = vld [vmem:[%s514_s1 + $0x68] sm:$0xff] }
   0x4   :  { %v95_v4 = vmul.f32 %v79_v2, %v63_v1  ;;  %v60_v15 = vld [vmem:[%s515_s2 + $0x60] sm:$0xff]  ;;  %v59_v20 = vld [vmem:[%s515_s2 + $0x58] sm:$0xff]  ;;  %v58_v25 = vld [vmem:[%s515_s2 + $0x50] sm:$0xff] }
   0x5   :  { %v110_v12 = vadd.f32 %v94_v8, %v46_v7  ;;  %v76_v16 = vld [vmem:[%s516_s3 + $0x60] sm:$0xff]  ;;  %v109_v17 = vadd.f32 %v93_v13, %v45_v14  ;;  %v75_v21 = vld [vmem:[%s516_s3 + $0x58] sm:$0xff]  ;;  %v74_v26 = vld [vmem:[%s516_s3 + $0x50] sm:$0xff] }
   0x6   :  { %v111_v11 = vadd.f32 %v95_v4, %v47_v0  ;;  %v92_v18 = vmul.f32 %v76_v16, %v60_v15  ;;  %v44_v19 = vld [vmem:[%s514_s1 + $0x60] sm:$0xff]  ;;  %v91_v23 = vmul.f32 %v75_v21, %v59_v20  ;;  %v43_v24 = vld [vmem:[%s514_s1 + $0x58] sm:$0xff] }
   0x8   :  { %235 = vmatpush3.xpose.msra.mxu0 %v111_v11  ;;  %v108_v22 = vadd.f32 %v92_v18, %v44_v19 }
   0x9   :  { %236 = vmatprep.subr.mxu0 %v294_v3 }
   0xc   :  { %237 = vmatpush3.xpose.msra.mxu0 %v110_v12 }
   0xd   :  { %238 = vmatprep.subr.mxu0 %v294_v3 }
  0x10   :  { %239 = vmatpush3.xpose.msra.mxu0 %v109_v17 }
  0x11   :  { %240 = vmatprep.subr.mxu0 %v294_v3 }
  0x12   :  { %12 = vsyncpa [#allocation4], 0  ;;  %v107_v27 = vadd.f32 %v91_v23, %v43_v24  ;;  %v90_v28 = vmul.f32 %v74_v26, %v58_v25  ;;  %v42_v29 = vld [vmem:[%s514_s1 + $0x50] sm:$0xff]  ;;  %v57_v30 = vld [vmem:[%s515_s2 + $0x48] sm:$0xff]  ;;  %v196_v19 = vlaneseq }
  0x13   :  { %v73_v31 = vld [vmem:[%s516_s3 + $0x48] sm:$0xff]  ;;  %v56_v35 = vld [vmem:[%s515_s2 + $0x40] sm:$0xff]  ;;  %v55_v40 = vld [vmem:[%s515_s2 + $0x38] sm:$0xff] }
  0x14   :  { %241 = vmatpush3.xpose.msra.mxu0 %v108_v22  ;;  %v106_v32 = vadd.f32 %v90_v28, %v42_v29  ;;  %v89_v33 = vmul.f32 %v73_v31, %v57_v30  ;;  %v41_v34 = vld [vmem:[%s514_s1 + $0x48] sm:$0xff]  ;;  %v72_v36 = vld [vmem:[%s516_s3 + $0x40] sm:$0xff]  ;;  %v71_v41 = vld [vmem:[%s516_s3 + $0x38] sm:$0xff]  ;;  %v197_v23 = vshrl.u32 %v196_v19, 7 }
  0x15   :  { %242 = vmatprep.subr.mxu0 %v294_v3  ;;  %v88_v38 = vmul.f32 %v72_v36, %v56_v35  ;;  %v40_v39 = vld [vmem:[%s514_s1 + $0x40] sm:$0xff]  ;;  %v87_v43 = vmul.f32 %v71_v41, %v55_v40  ;;  %v39_v44 = vld [vmem:[%s514_s1 + $0x38] sm:$0xff]  ;;  %v54_v45 = vld [vmem:[%s515_s2 + $0x30] sm:$0xff] }
  0x16   :  { %v105_v37 = vadd.f32 %v89_v33, %v41_v34  ;;  %v70_v46 = vld [vmem:[%s516_s3 + $0x30] sm:$0xff]  ;;  %v53_v50 = vld [vmem:[%s515_s2 + $0x28] sm:$0xff]  ;;  %v52_v55 = vld [vmem:[%s515_s2 + $0x20] sm:$0xff]  ;;  %v198_v25 = vsub.s32 0, %v197_v23 }
  0x17   :  { %v104_v42 = vadd.f32 %v88_v38, %v40_v39  ;;  %v103_v47 = vadd.f32 %v87_v43, %v39_v44  ;;  %v86_v48 = vmul.f32 %v70_v46, %v54_v45  ;;  %v38_v49 = vld [vmem:[%s514_s1 + $0x30] sm:$0xff]  ;;  %v69_v51 = vld [vmem:[%s516_s3 + $0x28] sm:$0xff]  ;;  %v68_v56 = vld [vmem:[%s516_s3 + $0x20] sm:$0xff] }
  0x18   :  { %243 = vmatpush3.xpose.msra.mxu0 %v107_v27  ;;  %v85_v53 = vmul.f32 %v69_v51, %v53_v50  ;;  %v37_v54 = vld [vmem:[%s514_s1 + $0x28] sm:$0xff]  ;;  %v84_v58 = vmul.f32 %v68_v56, %v52_v55  ;;  %v36_v59 = vld [vmem:[%s514_s1 + $0x20] sm:$0xff]  ;;  %v51_v60 = vld [vmem:[%s515_s2 + $0x18] sm:$0xff] }
  0x19   :  { %244 = vmatprep.subr.mxu0 %v294_v3  ;;  %v102_v52 = vadd.f32 %v86_v48, %v38_v49  ;;  %v67_v61 = vld [vmem:[%s516_s3 + $0x18] sm:$0xff]  ;;  %v50_v1 = vld [vmem:[%s515_s2 + $0x10] sm:$0xff]  ;;  %v49_v7 = vld [vmem:[%s515_s2 + $0x8] sm:$0xff] }
  0x1a   :  { %v101_v57 = vadd.f32 %v85_v53, %v37_v54  ;;  %v100_v62 = vadd.f32 %v84_v58, %v36_v59  ;;  %v83_v63 = vmul.f32 %v67_v61, %v51_v60  ;;  %v35_v0 = vld [vmem:[%s514_s1 + $0x18] sm:$0xff]  ;;  %v66_v2 = vld [vmem:[%s516_s3 + $0x10] sm:$0xff]  ;;  %v65_v8 = vld [vmem:[%s516_s3 + $0x8] sm:$0xff] }
  0x1b   :  { %v82_v5 = vmul.f32 %v66_v2, %v50_v1  ;;  %v34_v6 = vld [vmem:[%s514_s1 + $0x10] sm:$0xff]  ;;  %v81_v10 = vmul.f32 %v65_v8, %v49_v7  ;;  %v33_v11 = vld [vmem:[%s514_s1 + $0x8] sm:$0xff]  ;;  %v48_v12 = vld [vmem:[%s515_s2] sm:$0xff] }
  0x1c   :  { %245 = vmatpush3.xpose.msra.mxu0 %v106_v32  ;;  %v99_v4 = vadd.f32 %v83_v63, %v35_v0  ;;  %v64_v13 = vld [vmem:[%s516_s3] sm:$0xff] }
  0x1d   :  { %246 = vmatprep.subr.mxu0 %v294_v3  ;;  %v98_v9 = vadd.f32 %v82_v5, %v34_v6  ;;  %v97_v14 = vadd.f32 %v81_v10, %v33_v11  ;;  %v80_v15 = vmul.f32 %v64_v13, %v48_v12  ;;  %v32_v16 = vld [vmem:[%s514_s1] sm:$0xff] }
  0x1e   :  { %v113_v18 = vld [vmem:[%s513_s0] sm:$0xff]  ;;  %s296_s0 = smov [#allocation3]  }
  0x1f   :  { %v96_v17 = vadd.f32 %v80_v15, %v32_v16  ;;  %v190_v20 = vld [vmem:[%s518_s5] sm:$0x1]  ;;  %s209_s10 = sshll.u32 %s296_s0, 4  ;;  %s210_s10 = int_to_ptr.vmem [resolvable:$true] %s209_s10 }
  0x20   :  { %247 = vmatpush3.xpose.msra.mxu0 %v105_v37  ;;  %v191_v21 = vld [vmem:[%s519_s6] sm:$0x1]  ;;  %s272_s5 = scalar_lea.vmem %s210_s10, 128  ;;  %p277_p1 = scmp.lt.s32.totalorder %s210_s10, %s210_s10 }
  0x21   :  { %248 = vmatprep.subr.mxu0 %v294_v3  ;;  %v192_v22 = vmul.f32 %v191_v21, %v190_v20  ;;  %p273_p0 = scmp.ne.s32.totalorder %s210_s10, %s272_s5  ;;  %p278_p2 = scmp.lt.s32.totalorder %s272_s5, %s272_s5 }
  0x23   :  { %p279_p3 = por %p278_p2, %p277_p1 }
  0x24   :  { %249 = vmatpush3.xpose.msra.mxu0 %v104_v42 }
  0x25   :  { %250 = vmatprep.subr.mxu0 %v294_v3  ;;  %p280_p4 = pnand %p279_p3, %p273_p0 }
  0x28   :  { %251 = vmatpush3.xpose.msra.mxu0 %v103_v47 }
  0x29   :  { %252 = vmatprep.subr.mxu0 %v294_v3 }
  0x2c   :  { %253 = vmatpush3.xpose.msra.mxu0 %v102_v52 }
  0x2d   :  { %254 = vmatprep.subr.mxu0 %v294_v3 }
  0x30   :  { %255 = vmatpush3.xpose.msra.mxu0 %v101_v57 }
  0x31   :  { %256 = vmatprep.subr.mxu0 %v294_v3 }
  0x34   :  { %257 = vmatpush3.xpose.msra.mxu0 %v100_v62 }
  0x35   :  { %258 = vmatprep.subr.mxu0 %v294_v3 }
  0x38   :  { %259 = vmatpush3.xpose.msra.mxu0 %v99_v4 }
  0x39   :  { %260 = vmatprep.subr.mxu0 %v294_v3 }
  0x3c   :  { %261 = vmatpush3.xpose.msra.mxu0 %v98_v9 }
  0x3d   :  { %262 = vmatprep.subr.mxu0 %v294_v3 }
  0x40   :  { %263 = vmatpush3.xpose.msra.mxu0 %v97_v14 }
  0x41   :  { %264 = vmatprep.subr.mxu0 %v294_v3  ;;  %v189_v3 = vld [vmem:[%s517_s4] sm:$0x1] }
  0x42   :  { %v193_v24 = vadd.f32 %v192_v22, %v189_v3 }
  0x44   :  { %265 = vmatpush3.xpose.msra.mxu0 %v96_v17  ;;  %v199_v26 = vrot.slane %v193_v24, %v198_v25 }
  0x47   :  { %267 = vmatmul.mubr.f32.vlgmr.msra.gmra.mxu0 %v113_v18 }
 0x107   :  { %v180_v27 = vpop.f32.mrf.mxu0 }
 0x108   :  { %v201_v28 = vadd.f32 %v199_v26, %v180_v27 }
 0x109   :  { %v268_v29 = vpop.f32.mrf.mxu0 }
 0x10a   :  { %202 = vst [vmem:[#allocation3] sm:$0xff] %v201_v28 }
 0x10b   :  { %283 = shalt.err (!%p280_p4)
}
 0x10c   :  { %212 = dma.vmem_to_hbm [thread:$0]  %s210_s10, 128, %s520_s7, [#allocation4]  }
 0x10d   :  { %292 = dma.done.wait [#allocation4], 128  }
 0x10e   :  { %293 = vsyncadd [#allocation4], 4294967168 }
 0x10f   :  { %216 = vsyncpa [#allocation4], 1 }

</bundles_post_ra>
